<compile_context>
chip_gen: v7x
topology: tpu7x:2x2x1
jax: 0.10.0
libtpu: 0.0.40
codegen_flags: <defaults>
</compile_context>

<pallas_src>
import jax
import jax.numpy as jnp
from jax import lax
from jax.experimental import pallas as pl
from jax.experimental.pallas import tpu as pltpu


LEAKY_SLOPE = 0.01  # nn.LeakyReLU default negative_slope


def policy_kernel(x_ref, w1_ref, w2_ref, o_ref):
    # x_ref : (TB, D)   w1_ref : (H, D)   w2_ref : (A, H)   o_ref : (TB, A)
    x = x_ref[...]
    w1 = w1_ref[...]
    w2 = w2_ref[...]

    # linear1 (no bias): x @ W1^T  -> (TB, H), contracting both last dims
    h = lax.dot_general(
        x, w1, (((1,), (1,)), ((), ())), preferred_element_type=jnp.float32
    )

    # dropout (inference mode -> identity)

    # LeakyReLU
    h = jnp.where(h >= 0, h, LEAKY_SLOPE * h)

    # linear2 (no bias): h @ W2^T  -> (TB, A), contracting both last dims
    logits = lax.dot_general(
        h, w2, (((1,), (1,)), ((), ())), preferred_element_type=jnp.float32
    )

    # softmax over last dim (numerically stable, f32 math)
    m = jnp.max(logits, axis=-1, keepdims=True)
    e = jnp.exp(logits - m)
    o_ref[...] = (e / jnp.sum(e, axis=-1, keepdims=True)).astype(o_ref.dtype)


def _round_up(n, m):
    return ((n + m - 1) // m) * m


def policy_forward(x, w1, w2, *, block_b=512):
    """x: (B, D) f32; w1: (H, D) PyTorch layout; w2: (A, H) PyTorch layout."""
    B, D = x.shape
    H = w1.shape[0]
    A = w2.shape[0]

    # Batch tile: sublane-aligned, capped at block_b rows (VMEM-friendly on
    # v7x's 64 MiB as well; re-derive if H grows substantially).
    TB = min(block_b, _round_up(B, 8))
    Bp = _round_up(B, TB)
    if Bp != B:
        # Zero rows -> uniform softmax rows; sliced off below.
        x = jnp.pad(x, ((0, Bp - B), (0, 0)))

    grid = (pl.cdiv(Bp, TB),)

    cost = pl.CostEstimate(
        flops=2 * Bp * (D * H + H * A),
        transcendentals=Bp * A,
        bytes_accessed=4 * (Bp * D + H * D + A * H + Bp * A),
    )

    out = pl.pallas_call(
        policy_kernel,
        out_shape=jax.ShapeDtypeStruct((Bp, A), jnp.float32),
        grid=grid,
        in_specs=[
            pl.BlockSpec((TB, D), lambda i: (i, 0)),   # x: tiled over batch
            pl.BlockSpec((H, D), lambda i: (0, 0)),    # W1: resident
            pl.BlockSpec((A, H), lambda i: (0, 0)),    # W2: resident
        ],
        out_specs=pl.BlockSpec((TB, A), lambda i: (i, 0)),
        compiler_params=pltpu.CompilerParams(
            dimension_semantics=("parallel",),
        ),
        cost_estimate=cost,
    )(x, w1, w2)

    return out[:B]


def _reference(x, w1, w2):
    h = x @ w1.T
    h = jnp.where(h >= 0, h, LEAKY_SLOPE * h)
    logits = h @ w2.T
    return jax.nn.softmax(logits, axis=-1)


if __name__ == "__main__":
    # Shapes implied by the module (e.g. CartPole): state dim 4, 128 hidden, 2 actions.
    B, D, H, A = 8, 4, 128, 2

    key = jax.random.PRNGKey(0)
    kx, k1, k2, kx2 = jax.random.split(key, 4)

    x = jax.random.normal(kx, (B, D), dtype=jnp.float32)

    # Deterministic init mimicking nn.Linear's uniform(-1/sqrt(fan_in), 1/sqrt(fan_in))
    bound1 = 1.0 / jnp.sqrt(jnp.float32(D))
    bound2 = 1.0 / jnp.sqrt(jnp.float32(H))
    w1 = jax.random.uniform(k1, (H, D), dtype=jnp.float32, minval=-bound1, maxval=bound1)
    w2 = jax.random.uniform(k2, (A, H), dtype=jnp.float32, minval=-bound2, maxval=bound2)

    # Small (single-tile) batch
    out = policy_forward(x, w1, w2)
    out = jax.block_until_ready(out)
    ref = _reference(x, w1, w2)
    assert out.shape == (B, A)
    assert jnp.allclose(out, ref, atol=1e-5, rtol=1e-5)
    assert jnp.allclose(jnp.sum(out, axis=-1), jnp.ones((B,)), atol=1e-5)

    # Larger, non-tile-divisible batch exercising the grid + padding path.
    B2 = 1000
    x2 = jax.random.normal(kx2, (B2, D), dtype=jnp.float32)
    out2 = policy_forward(x2, w1, w2)
    out2 = jax.block_until_ready(out2)
    ref2 = _reference(x2, w1, w2)
    assert out2.shape == (B2, A)
    assert jnp.allclose(out2, ref2, atol=1e-5, rtol=1e-5)
    assert jnp.allclose(jnp.sum(out2, axis=-1), jnp.ones((B2,)), atol=1e-5)

    print("KERNEL_OK")
</pallas_src>

<mosaic_0001>
module attributes {stable_mosaic.version = 11 : i64} {
  func.func @policy_kernel(%arg0: i32, %arg1: memref<8x4xf32, #tpu.memory_space<vmem>>, %arg2: memref<128x4xf32, #tpu.memory_space<vmem>>, %arg3: memref<2x128xf32, #tpu.memory_space<vmem>>, %arg4: memref<8x2xf32, #tpu.memory_space<vmem>>) attributes {dimension_semantics = [#tpu.dimension_semantics<parallel>], iteration_bounds = array<i64: 1>, scalar_prefetch = 0 : i64, scratch_operands = 0 : i64, tpu.core_type = #tpu.core_type<tc>, window_params = [{transform_indices = @transform_0, window_bounds = array<i64: 8, 4>}, {pipeline_mode = #tpu.pipeline_mode<synchronous>, transform_indices = @transform_1, window_bounds = array<i64: 128, 4>}, {pipeline_mode = #tpu.pipeline_mode<synchronous>, transform_indices = @transform_2, window_bounds = array<i64: 2, 128>}, {transform_indices = @transform_3, window_bounds = array<i64: 8, 2>}]} {
    %c0 = arith.constant 0 : index
    %c0_0 = arith.constant 0 : index
    %0 = vector.load %arg1[%c0, %c0_0] : memref<8x4xf32, #tpu.memory_space<vmem>>, vector<8x4xf32>
    %c0_1 = arith.constant 0 : index
    %c0_2 = arith.constant 0 : index
    %1 = vector.load %arg2[%c0_1, %c0_2] : memref<128x4xf32, #tpu.memory_space<vmem>>, vector<128x4xf32>
    %c0_3 = arith.constant 0 : index
    %c0_4 = arith.constant 0 : index
    %2 = vector.load %arg3[%c0_3, %c0_4] : memref<2x128xf32, #tpu.memory_space<vmem>>, vector<2x128xf32>
    %cst = arith.constant dense<0.000000e+00> : vector<8x128xf32>
    %3 = tpu.matmul %0, %1, %cst {dimension_numbers = #tpu.dot_dimension_numbers<[1], [1], [0], [0], [0, 0, 1, 0], [], []>} : vector<8x4xf32>, vector<128x4xf32>, vector<8x128xf32> -> vector<8x128xf32>
    %cst_5 = arith.constant 0.000000e+00 : f32
    %4 = vector.broadcast %cst_5 : f32 to vector<8x128xf32>
    %5 = arith.cmpf oge, %3, %4 : vector<8x128xf32>
    %cst_6 = arith.constant 0.00999999977 : f32
    %6 = vector.broadcast %cst_6 : f32 to vector<8x128xf32>
    %7 = arith.mulf %6, %3 : vector<8x128xf32>
    %8 = arith.select %5, %3, %7 : vector<8x128xi1>, vector<8x128xf32>
    %cst_7 = arith.constant dense<0.000000e+00> : vector<8x2xf32>
    %9 = tpu.matmul %8, %2, %cst_7 {dimension_numbers = #tpu.dot_dimension_numbers<[1], [1], [0], [0], [0, 0, 1, 0], [], []>} : vector<8x128xf32>, vector<2x128xf32>, vector<8x2xf32> -> vector<8x2xf32>
    %cst_8 = arith.constant dense<0xFF800000> : vector<8xf32>
    %10 = vector.multi_reduction <maximumf>, %9, %cst_8 [1] : vector<8x2xf32> to vector<8xf32>
    %11 = vector.shape_cast %10 : vector<8xf32> to vector<8x1xf32>
    %12 = vector.broadcast %11 : vector<8x1xf32> to vector<8x2xf32>
    %13 = arith.subf %9, %12 : vector<8x2xf32>
    %14 = math.exp %13 : vector<8x2xf32>
    %cst_9 = arith.constant dense<0.000000e+00> : vector<8xf32>
    %15 = vector.multi_reduction <add>, %14, %cst_9 [1] : vector<8x2xf32> to vector<8xf32>
    %16 = vector.shape_cast %15 : vector<8xf32> to vector<8x1xf32>
    %17 = vector.broadcast %16 : vector<8x1xf32> to vector<8x2xf32>
    %18 = arith.divf %14, %17 : vector<8x2xf32>
    %c0_10 = arith.constant 0 : index
    %c0_11 = arith.constant 0 : index
    %19 = vector.load %arg4[%c0_10, %c0_11] : memref<8x2xf32, #tpu.memory_space<vmem>>, vector<8x2xf32>
    tpu.vector_store %arg4[%c0_10, %c0_11], %18 {strides = array<i32>} : memref<8x2xf32, #tpu.memory_space<vmem>>, vector<8x2xf32>,
    return
  }
  func.func @transform_0(%arg0: i32) -> (i32, i32) {
    %c0_i32 = arith.constant 0 : i32
    %c0_i32_0 = arith.constant 0 : i32
    return %arg0, %c0_i32 : i32, i32
  }
  func.func @transform_1(%arg0: i32) -> (i32, i32) {
    %c0_i32 = arith.constant 0 : i32
    %c0_i32_0 = arith.constant 0 : i32
    %c0_i32_1 = arith.constant 0 : i32
    return %c0_i32, %c0_i32_0 : i32, i32
  }
  func.func @transform_2(%arg0: i32) -> (i32, i32) {
    %c0_i32 = arith.constant 0 : i32
    %c0_i32_0 = arith.constant 0 : i32
    %c0_i32_1 = arith.constant 0 : i32
    return %c0_i32, %c0_i32_0 : i32, i32
  }
  func.func @transform_3(%arg0: i32) -> (i32, i32) {
    %c0_i32 = arith.constant 0 : i32
    %c0_i32_0 = arith.constant 0 : i32
    return %arg0, %c0_i32 : i32, i32
  }
}

</mosaic_0001>

<bundles_post_ra>
// kernel: tpu_custom_call.1
= control target key start
LH: loop header
LB: loop body
LE: loop exit
PB: predicated region body
PF: predicated region fallthrough
CT: control target
= control target key end

     0   :  { %vm32_vm0 = vcmask 31744   ;;  %v359_v0 = vmov 0.0|0.0   ;;  %vm360_vm2 = vmmov 0   ;;  %v361_v4 = vmov 0.0   ;;  %s465_s1 = inlined_call_operand.vmem [shape: f32[128,4], index: 1, kind: input, shape index: {}]   ;;  %s466_s0 = inlined_call_operand.vmem [shape: f32[8,4], index: 0, kind: input, shape index: {}]   ;;  %s467_s2 = inlined_call_operand.vmem [shape: f32[2,128], index: 2, kind: input, shape index: {}]   ;;  %s468_s3 = inlined_call_operand.vmem [shape: f32[8,2], index: 3, kind: output, shape index: {}]  }
   0x1   :  { %320 = vmatprep.subr.bf16.mxu0 %v359_v0  ;;  %v15_v1 = vld [vmem:[%s465_s1] sm:$0xff]  ;;  %v16_v2 = vld [vmem:[%s465_s1 + $0x8] sm:$0xff]  ;;  %vm390_vm1 = vmpackc.low %vm32_vm0, %vm32_vm0  ;;  %312 = vmatprep.mubr.msk.f32.mxu0 %vm360_vm2, %v361_v4  ;;  %vm227_vm4 = vcmask 15360  }
   0x2   :  { %v321_v5 = vpack.c.bf16 %v16_v2, %v15_v1  ;;  %315 = vmatprep.subr.mxu1 %v361_v4  ;;  %317 = vmatprep.mubr.msk.f32.mxu1 %vm360_vm2, %v361_v4  ;;  %v17_v6 = vld [vmem:[%s465_s1 + $0x10] sm:$0xff]  ;;  %v18_v7 = vld [vmem:[%s465_s1 + $0x18] sm:$0xff]  ;;  %v19_v9 = vld [vmem:[%s465_s1 + $0x20] sm:$0xff] }
   0x3   :  { %v325_v8 = vpack.c.bf16 %v18_v7, %v17_v6  ;;  %v20_v10 = vld [vmem:[%s465_s1 + $0x28] sm:$0xff]  ;;  %v21_v12 = vld [vmem:[%s465_s1 + $0x30] sm:$0xff]  ;;  %v22_v13 = vld [vmem:[%s465_s1 + $0x38] sm:$0xff] }
   0x4   :  { %323 = vmatpush3.bf16.xpose.msk.msra.mxu0 %vm390_vm1, %v321_v5  ;;  %v329_v11 = vpack.c.bf16 %v20_v10, %v19_v9  ;;  %v333_v14 = vpack.c.bf16 %v22_v13, %v21_v12  ;;  %v23_v15 = vld [vmem:[%s465_s1 + $0x40] sm:$0xff]  ;;  %v24_v16 = vld [vmem:[%s465_s1 + $0x48] sm:$0xff]  ;;  %v25_v18 = vld [vmem:[%s465_s1 + $0x50] sm:$0xff] }
   0x5   :  { %324 = vmatprep.subr.bf16.mxu0 %v359_v0  ;;  %v337_v17 = vpack.c.bf16 %v24_v16, %v23_v15  ;;  %v26_v19 = vld [vmem:[%s465_s1 + $0x58] sm:$0xff]  ;;  %v27_v21 = vld [vmem:[%s465_s1 + $0x60] sm:$0xff]  ;;  %v28_v22 = vld [vmem:[%s465_s1 + $0x68] sm:$0xff] }
   0x6   :  { %v341_v20 = vpack.c.bf16 %v26_v19, %v25_v18  ;;  %v345_v23 = vpack.c.bf16 %v28_v22, %v27_v21  ;;  %v29_v24 = vld [vmem:[%s465_s1 + $0x70] sm:$0xff]  ;;  %v30_v25 = vld [vmem:[%s465_s1 + $0x78] sm:$0xff]  ;;  %v14_v27 = vld [vmem:[%s466_s0] sm:$0xff] }
   0x7   :  { %v349_v26 = vpack.c.bf16 %v30_v25, %v29_v24  ;;  %v31_v28 = vld [vmem:[%s467_s2] sm:$0x3] }
   0x8   :  { %316 = vmatpush3.xpose.msra.mxu1 %v31_v28 }
   0xc   :  { %327 = vmatpush3.bf16.xpose.msk.msra.mxu0 %vm390_vm1, %v325_v8 }
   0xd   :  { %328 = vmatprep.subr.bf16.mxu0 %v359_v0 }
  0x14   :  { %331 = vmatpush3.bf16.xpose.msk.msra.mxu0 %vm390_vm1, %v329_v11 }
  0x15   :  { %332 = vmatprep.subr.bf16.mxu0 %v359_v0 }
  0x1c   :  { %335 = vmatpush3.bf16.xpose.msk.msra.mxu0 %vm390_vm1, %v333_v14 }
  0x1d   :  { %336 = vmatprep.subr.bf16.mxu0 %v359_v0 }
  0x24   :  { %339 = vmatpush3.bf16.xpose.msk.msra.mxu0 %vm390_vm1, %v337_v17 }
  0x25   :  { %340 = vmatprep.subr.bf16.mxu0 %v359_v0 }
  0x2c   :  { %343 = vmatpush3.bf16.xpose.msk.msra.mxu0 %vm390_vm1, %v341_v20 }
  0x2d   :  { %344 = vmatprep.subr.bf16.mxu0 %v359_v0 }
  0x34   :  { %347 = vmatpush3.bf16.xpose.msk.msra.mxu0 %vm390_vm1, %v345_v23 }
  0x35   :  { %348 = vmatprep.subr.bf16.mxu0 %v359_v0 }
  0x3c   :  { %351 = vmatpush3.bf16.xpose.msk.msra.mxu0 %vm390_vm1, %v349_v26 }
  0x43   :  { %313 = vmatmul.mubr.msk.f32.vlgmr.msra.gmra.mrb[0].mxu0 %vm32_vm0, %v14_v27 }
 0x116   :  { %v150_v29 = vpop.f32.mrb[0].mxu0 }
 0x117   :  { %vm154_vm3 = vcmp.ge.f32.partialorder %v150_v29, 0.0  ;;  %v155_v30 = vmul.f32 0.01, %v150_v29  ;;  %v314_v31 = vpop.f32.mrb[1].mxu0 }
 0x119   :  { %v156_v32 = vsel %vm154_vm3, %v150_v29, %v155_v30 }
 0x11a   :  { %318 = vmatmul.mubr.f32.vlgmr.msra.gmra.mrb[0].mxu1 %v156_v32 }
 0x1ed   :  { %v223_v33 = vpop.f32.mrb[0].mxu1 }
 0x1ee   :  { %v319_v34 = vpop.f32.mrb[1].mxu1  ;;  %v228_v35 = vsel %vm227_vm4, %v223_v33, -inf }
 0x1ef   :  { %229 = vmax.xlane.f32.xlu0 %v228_v35 }
 0x27c   :  { %v230_v36 = vpop.xlane.xlu0 %229 }
 0x27d   :  { %v231_v37 = vsub.f32 %v223_v33, %v230_v36 }
 0x27f   :  { %v232_v38 = vmul.f32 1.442695, %v231_v37 }
 0x281   :  { %355 = vpow2.f32 %v232_v38 }
 0x28b   :  { %v356_v39 = vpop.eup %355 }
 0x28c   :  { %v234_v40 = vsel %vm227_vm4, %v356_v39, 0.0 }
 0x28d   :  { %235 = vadd.xlane.f32.xlu0 %v234_v40 }
 0x31a   :  { %v236_v41 = vpop.xlane.xlu0 %235 }
 0x31b   :  { %357 = vrcp.f32 %v236_v41 }
 0x325   :  { %v358_v42 = vpop.eup %357 }
 0x326   :  { %v238_v43 = vmul.f32 %v358_v42, %v356_v39 }
 0x328   :  { %239 = vst.msk [vmem:[%s468_s3] sm:$0xff] %vm227_vm4, %v238_v43 }

</bundles_post_ra>
